<compile_context>
chip_gen: v6e
topology: v6e:2x2x1
jax: 0.10.0
libtpu: 0.0.40
codegen_flags: <defaults>
</compile_context>

<pallas_src>
import functools

import jax
import jax.numpy as jnp
import numpy as np
from jax import lax
from jax.experimental import pallas as pl
from jax.experimental.pallas import tpu as pltpu

BN_EPS = 1e-5


def _psa_kernel(x_ref, wkv_ref, bkv_ref, ww_ref, bw_ref, o_ref, *, ck):
    """One grid step: T independent spatial blocks of pyramid self-attention.

    x_ref  : (T, Cin, L) bf16   input tiles, spatial-last (L on the lane axis)
    wkv_ref: (Ck+Cv, Cin) bf16  fused f_key(+BN, +ck**-0.25) / f_value weight
    bkv_ref: (Ck+Cv, 1)   f32   fused bias
    ww_ref : (Cout, Cv)   bf16  output 1x1 conv W
    bw_ref : (Cout, 1)    f32
    o_ref  : (T, Cout, L)
    """
    wkv = wkv_ref[...]
    bkv = bkv_ref[...]
    ww = ww_ref[...]
    bw = bw_ref[...]
    n_t, _, L = x_ref.shape
    cv = ww.shape[1]

    # Hoisted loop invariant (JAX does not CSE broadcast_in_dim inside loops).
    ones_row = jnp.ones((1, L), jnp.float32)

    for t in range(n_t):  # static unroll over the T spatial blocks of this step
        x_t = x_ref[t]                                                     # (Cin, L) bf16

        # Fused key/query + value projection: single MXU launch per tile.
        proj = jnp.dot(wkv, x_t, preferred_element_type=jnp.float32) + bkv  # (Ck+Cv, L)
        kq = jnp.maximum(proj[:ck, :], 0.0)                                # (Ck, L) f32
        v = proj[ck:, :]                                                   # (Cv, L) f32

        # sim = kq^T kq  (ck**-0.5 already folded into the projection weights)
        kq_b = kq.astype(jnp.bfloat16)
        kqT_b = kq.T.astype(jnp.bfloat16)                                  # (L, Ck)
        sim = jnp.dot(kqT_b, kq_b, preferred_element_type=jnp.float32)     # (L, L)

        # Unnormalized numerically-stable softmax (f32; exp runs on the EUP).
        p = jnp.exp(sim - jnp.max(sim, axis=-1, keepdims=True))            # (L, L)

        # Append a ones-row to V: one MXU pass yields both the context
        # numerator and the softmax denominator, lane-aligned with ctx.
        v_aug = jnp.concatenate([v, ones_row], axis=0)                     # (Cv+1, L)
        ctx_aug = lax.dot_general(
            v_aug.astype(jnp.bfloat16), p.astype(jnp.bfloat16),
            dimension_numbers=(((1,), (1,)), ((), ())),
            preferred_element_type=jnp.float32)                            # (Cv+1, L)

        # Output 1x1 conv.  The softmax normalization is a per-column scale,
        # so it commutes with the matmul: apply the approx reciprocal (EUP)
        # after the projection on the smaller (Cout, L) tile, fused with bias.
        num = jnp.dot(ww, ctx_aug[:cv, :].astype(jnp.bfloat16),
                      preferred_element_type=jnp.float32)                  # (Cout, L)
        inv = pl.reciprocal(ctx_aug[cv:cv + 1, :], approx=True)            # (1, L)
        o_ref[t] = (num * inv + bw).astype(o_ref.dtype)


def _to_block_tiles(x_nchw, scale):
    b, c, h, w = x_nchw.shape
    sh, sw = h // scale, w // scale
    x = x_nchw.reshape(b, c, scale, sh, scale, sw)
    x = jnp.transpose(x, (0, 2, 4, 1, 3, 5))          # (b, si, sj, c, sh, sw)
    x = x.reshape(b * scale * scale, c, sh * sw)      # (tiles, C, L) spatial-last
    # bf16 cast fuses into the relayout above; halves kernel input DMA bytes.
    return x.astype(jnp.bfloat16)


def _from_block_tiles(y, b, scale, h, w, c):
    sh, sw = h // scale, w // scale
    y = y.reshape(b, scale, scale, c, sh, sw)
    y = jnp.transpose(y, (0, 3, 1, 4, 2, 5))          # (b, c, si, sh, sj, sw)
    return y.reshape(b, c, h, w)


@functools.partial(jax.jit, static_argnames=("scale",))
def pyramid_self_attention(x_nchw, params, scale):
    b, cin, h, w = x_nchw.shape
    assert h % scale == 0 and w % scale == 0, "H, W must be divisible by scale"
    sh, sw = h // scale, w // scale
    L = sh * sw
    num_tiles = b * scale * scale

    ck = params["wk"].shape[0]
    cv = params["wv"].shape[0]
    cout = params["ww"].shape[0]

    # Fold eval-mode BatchNorm AND the ck**-0.25 attention scale into f_key
    # (positive scale commutes with ReLU; both kq factors carry ck**-0.25).
    bn_scale = params["bn_gamma"] / jnp.sqrt(params["bn_var"] + BN_EPS)
    kq_scale = float(ck) ** -0.25
    wk_fold = params["wk"] * (bn_scale * kq_scale)[:, None]                 # (Ck, Cin)
    bk_fold = ((params["bk"] - params["bn_mean"]) * bn_scale
               + params["bn_beta"]) * kq_scale                              # (Ck,)

    # Fused projection weights (bf16 operands for the MXU, f32 biases).
    wkv = jnp.concatenate([wk_fold, params["wv"]], axis=0).astype(jnp.bfloat16)
    bkv = jnp.concatenate([bk_fold, params["bv"]]).reshape(-1, 1).astype(jnp.float32)
    ww = params["ww"].astype(jnp.bfloat16)                                  # (Cout, Cv)
    bw = params["bw"].reshape(-1, 1).astype(jnp.float32)

    x_tiles = _to_block_tiles(x_nchw, scale)          # (tiles, Cin, L) bf16

    # Keep >=2 grid steps when possible so v7x can shard across both TCs.
    num_blocks = 2 if (num_tiles >= 2 and num_tiles % 2 == 0) else 1
    tpb = num_tiles // num_blocks
    dcat = ck + cv

    kernel = functools.partial(_psa_kernel, ck=ck)
    out_tiles = pl.pallas_call(
        kernel,
        out_shape=jax.ShapeDtypeStruct((num_tiles, cout, L), x_nchw.dtype),
        grid=(num_blocks,),
        in_specs=[
            pl.BlockSpec((tpb, cin, L), lambda i: (i, 0, 0)),
            pl.BlockSpec((dcat, cin), lambda i: (0, 0)),
            pl.BlockSpec((dcat, 1), lambda i: (0, 0)),
            pl.BlockSpec((cout, cv), lambda i: (0, 0)),
            pl.BlockSpec((cout, 1), lambda i: (0, 0)),
        ],
        out_specs=pl.BlockSpec((tpb, cout, L), lambda i: (i, 0, 0)),
        compiler_params=pltpu.CompilerParams(
            dimension_semantics=("parallel",),
            vmem_limit_bytes=32 * 1024 * 1024),
    )(x_tiles, wkv, bkv, ww, bw)

    return _from_block_tiles(out_tiles, b, scale, h, w, cout)


def reference_forward(x, p, scale):
    """Pure-JAX mirror of the PyTorch forward (eval-mode BN), f32 throughout."""
    b, cin, h, w = x.shape

    def conv1x1(t, w_oc_ic, bias):
        return jnp.einsum("nchw,oc->nohw", t, w_oc_ic) + bias[None, :, None, None]

    pre = conv1x1(x, p["wk"], p["bk"])
    bn = (pre - p["bn_mean"][None, :, None, None]) / jnp.sqrt(
        p["bn_var"][None, :, None, None] + BN_EPS)
    keyq = jnp.maximum(bn * p["bn_gamma"][None, :, None, None]
                       + p["bn_beta"][None, :, None, None], 0.0)
    value = conv1x1(x, p["wv"], p["bv"])

    ck = p["wk"].shape[0]
    cv = p["wv"].shape[0]
    sh, sw = h // scale, w // scale
    rows = []
    for i in range(scale):
        cols = []
        for j in range(scale):
            sl = (slice(None), slice(None),
                  slice(i * sh, (i + 1) * sh), slice(j * sw, (j + 1) * sw))
            q = keyq[sl].reshape(b, ck, -1).transpose(0, 2, 1)
            k = keyq[sl].reshape(b, ck, -1)
            v = value[sl].reshape(b, cv, -1).transpose(0, 2, 1)
            sim = jnp.matmul(q, k) * (ck ** -0.5)
            sim = jax.nn.softmax(sim, axis=-1)
            ctx = jnp.matmul(sim, v).transpose(0, 2, 1).reshape(b, cv, sh, sw)
            cols.append(ctx)
        rows.append(jnp.concatenate(cols, axis=3))
    context = jnp.concatenate(rows, axis=2)
    return conv1x1(context, p["ww"], p["bw"])


if __name__ == "__main__":
    # Small shapes consistent with the module.
    B, C_IN, H, W = 2, 4, 16, 16
    C_KEY, C_VAL = 8, 8
    C_OUT = C_IN          # out_channels=None -> in_channels
    SCALE = 2

    root = jax.random.PRNGKey(0)
    keys = jax.random.split(root, 12)

    x = jax.random.normal(keys[0], (B, C_IN, H, W), dtype=jnp.float32)

    params = {
        # f_key: Conv2d(C_IN, C_KEY, 1) weight stored as (out, in) + bias
        "wk": jax.random.normal(keys[1], (C_KEY, C_IN), jnp.float32) * 0.3,
        "bk": jax.random.normal(keys[2], (C_KEY,), jnp.float32) * 0.1,
        # BatchNorm2d(C_KEY) — eval-mode running stats + affine
        "bn_gamma": jax.random.uniform(keys[3], (C_KEY,), jnp.float32, 0.5, 1.5),
        "bn_beta": jax.random.normal(keys[4], (C_KEY,), jnp.float32) * 0.1,
        "bn_mean": jax.random.normal(keys[5], (C_KEY,), jnp.float32) * 0.1,
        "bn_var": jax.random.uniform(keys[6], (C_KEY,), jnp.float32, 0.5, 1.5),
        # f_value: Conv2d(C_IN, C_VAL, 1)
        "wv": jax.random.normal(keys[7], (C_VAL, C_IN), jnp.float32) * 0.3,
        "bv": jax.random.normal(keys[8], (C_VAL,), jnp.float32) * 0.1,
        # W: Conv2d(C_VAL, C_OUT, 1) — zero-init in PyTorch, non-zero here so the
        # full compute path is exercised and checkable.
        "ww": jax.random.normal(keys[9], (C_OUT, C_VAL), jnp.float32) * 0.3,
        "bw": jax.random.normal(keys[10], (C_OUT,), jnp.float32) * 0.1,
    }

    out = pyramid_self_attention(x, params, SCALE)
    out = jax.block_until_ready(out)

    ref = reference_forward(x, params, SCALE)
    # Tolerance accounts for bf16 MXU operands + approx reciprocal in the kernel.
    np.testing.assert_allclose(np.asarray(out), np.asarray(ref),
                               rtol=3e-2, atol=3e-2)

    print("KERNEL_OK")
</pallas_src>

<mosaic_0001>
module attributes {stable_mosaic.version = 11 : i64} {
  func.func @_psa_kernel(%arg0: i32, %arg1: memref<4x4x64xbf16, #tpu.memory_space<vmem>>, %arg2: memref<16x4xbf16, #tpu.memory_space<vmem>>, %arg3: memref<16x1xf32, #tpu.memory_space<vmem>>, %arg4: memref<4x8xbf16, #tpu.memory_space<vmem>>, %arg5: memref<4x1xf32, #tpu.memory_space<vmem>>, %arg6: memref<4x4x64xf32, #tpu.memory_space<vmem>>) attributes {dimension_semantics = [#tpu.dimension_semantics<parallel>], iteration_bounds = array<i64: 2>, scalar_prefetch = 0 : i64, scratch_operands = 0 : i64, tpu.core_type = #tpu.core_type<tc>, window_params = [{transform_indices = @transform_0, window_bounds = array<i64: 4, 4, 64>}, {pipeline_mode = #tpu.pipeline_mode<synchronous>, transform_indices = @transform_1, window_bounds = array<i64: 16, 4>}, {pipeline_mode = #tpu.pipeline_mode<synchronous>, transform_indices = @transform_2, window_bounds = array<i64: 16, 1>}, {pipeline_mode = #tpu.pipeline_mode<synchronous>, transform_indices = @transform_3, window_bounds = array<i64: 4, 8>}, {pipeline_mode = #tpu.pipeline_mode<synchronous>, transform_indices = @transform_4, window_bounds = array<i64: 4, 1>}, {transform_indices = @transform_5, window_bounds = array<i64: 4, 4, 64>}]} {
    %c0 = arith.constant 0 : index
    %c0_0 = arith.constant 0 : index
    %0 = vector.load %arg2[%c0, %c0_0] : memref<16x4xbf16, #tpu.memory_space<vmem>>, vector<16x4xbf16>
    %c0_1 = arith.constant 0 : index
    %c0_2 = arith.constant 0 : index
    %1 = vector.load %arg3[%c0_1, %c0_2] : memref<16x1xf32, #tpu.memory_space<vmem>>, vector<16x1xf32>
    %c0_3 = arith.constant 0 : index
    %c0_4 = arith.constant 0 : index
    %2 = vector.load %arg4[%c0_3, %c0_4] : memref<4x8xbf16, #tpu.memory_space<vmem>>, vector<4x8xbf16>
    %c0_5 = arith.constant 0 : index
    %c0_6 = arith.constant 0 : index
    %3 = vector.load %arg5[%c0_5, %c0_6] : memref<4x1xf32, #tpu.memory_space<vmem>>, vector<4x1xf32>
    %cst = arith.constant 1.000000e+00 : f32
    %4 = vector.broadcast %cst : f32 to vector<1x64xf32>
    %c0_7 = arith.constant 0 : index
    %c0_8 = arith.constant 0 : index
    %c0_9 = arith.constant 0 : index
    %5 = vector.load %arg1[%c0_7, %c0_8, %c0_9] : memref<4x4x64xbf16, #tpu.memory_space<vmem>>, vector<1x4x64xbf16>
    %6 = vector.shape_cast %5 : vector<1x4x64xbf16> to vector<4x64xbf16>
    %cst_10 = arith.constant dense<0.000000e+00> : vector<16x64xf32>
    %7 = tpu.matmul %0, %6, %cst_10 {dimension_numbers = #tpu.dot_dimension_numbers<[1], [0], [0], [1], [0, 0, 1, 1], [], []>} : vector<16x4xbf16>, vector<4x64xbf16>, vector<16x64xf32> -> vector<16x64xf32>
    %8 = vector.broadcast %1 : vector<16x1xf32> to vector<16x64xf32>
    %9 = arith.addf %7, %8 : vector<16x64xf32>
    %10 = vector.extract_strided_slice %9 {offsets = [0, 0], sizes = [8, 64], strides = [1, 1]} : vector<16x64xf32> to vector<8x64xf32>
    %cst_11 = arith.constant 0.000000e+00 : f32
    %11 = vector.broadcast %cst_11 : f32 to vector<8x64xf32>
    %12 = arith.maximumf %10, %11 : vector<8x64xf32>
    %13 = vector.extract_strided_slice %9 {offsets = [8, 0], sizes = [8, 64], strides = [1, 1]} : vector<16x64xf32> to vector<8x64xf32>
    %14 = arith.truncf %12 : vector<8x64xf32> to vector<8x64xbf16>
    %15 = tpu.transpose %12, [1, 0] : vector<8x64xf32> -> vector<64x8xf32>
    %16 = arith.truncf %15 : vector<64x8xf32> to vector<64x8xbf16>
    %cst_12 = arith.constant dense<0.000000e+00> : vector<64x64xf32>
    %17 = tpu.matmul %16, %14, %cst_12 {dimension_numbers = #tpu.dot_dimension_numbers<[1], [0], [0], [1], [0, 0, 1, 1], [], []>} : vector<64x8xbf16>, vector<8x64xbf16>, vector<64x64xf32> -> vector<64x64xf32>
    %cst_13 = arith.constant dense<0xFF800000> : vector<64xf32>
    %18 = vector.multi_reduction <maximumf>, %17, %cst_13 [1] : vector<64x64xf32> to vector<64xf32>
    %19 = vector.shape_cast %18 : vector<64xf32> to vector<64x1xf32>
    %20 = vector.broadcast %19 : vector<64x1xf32> to vector<64x64xf32>
    %21 = arith.subf %17, %20 : vector<64x64xf32>
    %22 = math.exp %21 : vector<64x64xf32>
    %23 = tpu.concatenate %13, %4 in 0 : vector<8x64xf32>, vector<1x64xf32> -> vector<9x64xf32>
    %24 = arith.truncf %23 : vector<9x64xf32> to vector<9x64xbf16>
    %25 = arith.truncf %22 : vector<64x64xf32> to vector<64x64xbf16>
    %cst_14 = arith.constant dense<0.000000e+00> : vector<9x64xf32>
    %26 = tpu.matmul %24, %25, %cst_14 {dimension_numbers = #tpu.dot_dimension_numbers<[1], [1], [0], [0], [0, 0, 1, 0], [], []>} : vector<9x64xbf16>, vector<64x64xbf16>, vector<9x64xf32> -> vector<9x64xf32>
    %27 = vector.extract_strided_slice %26 {offsets = [0, 0], sizes = [8, 64], strides = [1, 1]} : vector<9x64xf32> to vector<8x64xf32>
    %28 = arith.truncf %27 : vector<8x64xf32> to vector<8x64xbf16>
    %cst_15 = arith.constant dense<0.000000e+00> : vector<4x64xf32>
    %29 = tpu.matmul %2, %28, %cst_15 {dimension_numbers = #tpu.dot_dimension_numbers<[1], [0], [0], [1], [0, 0, 1, 1], [], []>} : vector<4x8xbf16>, vector<8x64xbf16>, vector<4x64xf32> -> vector<4x64xf32>
    %30 = vector.extract_strided_slice %26 {offsets = [8, 0], sizes = [1, 64], strides = [1, 1]} : vector<9x64xf32> to vector<1x64xf32>
    %31 = tpu.reciprocal %30 {approx = true} : vector<1x64xf32> -> vector<1x64xf32>
    %32 = vector.broadcast %31 : vector<1x64xf32> to vector<4x64xf32>
    %33 = arith.mulf %29, %32 : vector<4x64xf32>
    %34 = vector.broadcast %3 : vector<4x1xf32> to vector<4x64xf32>
    %35 = arith.addf %33, %34 : vector<4x64xf32>
    %c0_16 = arith.constant 0 : index
    %c0_17 = arith.constant 0 : index
    %c0_18 = arith.constant 0 : index
    %36 = vector.load %arg6[%c0_16, %c0_17, %c0_18] : memref<4x4x64xf32, #tpu.memory_space<vmem>>, vector<1x4x64xf32>
    %37 = vector.shape_cast %36 : vector<1x4x64xf32> to vector<4x64xf32>
    %38 = vector.shape_cast %35 : vector<4x64xf32> to vector<1x4x64xf32>
    tpu.vector_store %arg6[%c0_16, %c0_17, %c0_18], %38 {strides = array<i32>} : memref<4x4x64xf32, #tpu.memory_space<vmem>>, vector<1x4x64xf32>,
    %c1 = arith.constant 1 : index
    %c0_19 = arith.constant 0 : index
    %c0_20 = arith.constant 0 : index
    %39 = vector.load %arg1[%c1, %c0_19, %c0_20] : memref<4x4x64xbf16, #tpu.memory_space<vmem>>, vector<1x4x64xbf16>
    %40 = vector.shape_cast %39 : vector<1x4x64xbf16> to vector<4x64xbf16>
    %cst_21 = arith.constant dense<0.000000e+00> : vector<16x64xf32>
    %41 = tpu.matmul %0, %40, %cst_21 {dimension_numbers = #tpu.dot_dimension_numbers<[1], [0], [0], [1], [0, 0, 1, 1], [], []>} : vector<16x4xbf16>, vector<4x64xbf16>, vector<16x64xf32> -> vector<16x64xf32>
    %42 = vector.broadcast %1 : vector<16x1xf32> to vector<16x64xf32>
    %43 = arith.addf %41, %42 : vector<16x64xf32>
    %44 = vector.extract_strided_slice %43 {offsets = [0, 0], sizes = [8, 64], strides = [1, 1]} : vector<16x64xf32> to vector<8x64xf32>
    %cst_22 = arith.constant 0.000000e+00 : f32
    %45 = vector.broadcast %cst_22 : f32 to vector<8x64xf32>
    %46 = arith.maximumf %44, %45 : vector<8x64xf32>
    %47 = vector.extract_strided_slice %43 {offsets = [8, 0], sizes = [8, 64], strides = [1, 1]} : vector<16x64xf32> to vector<8x64xf32>
    %48 = arith.truncf %46 : vector<8x64xf32> to vector<8x64xbf16>
    %49 = tpu.transpose %46, [1, 0] : vector<8x64xf32> -> vector<64x8xf32>
    %50 = arith.truncf %49 : vector<64x8xf32> to vector<64x8xbf16>
    %cst_23 = arith.constant dense<0.000000e+00> : vector<64x64xf32>
    %51 = tpu.matmul %50, %48, %cst_23 {dimension_numbers = #tpu.dot_dimension_numbers<[1], [0], [0], [1], [0, 0, 1, 1], [], []>} : vector<64x8xbf16>, vector<8x64xbf16>, vector<64x64xf32> -> vector<64x64xf32>
    %cst_24 = arith.constant dense<0xFF800000> : vector<64xf32>
    %52 = vector.multi_reduction <maximumf>, %51, %cst_24 [1] : vector<64x64xf32> to vector<64xf32>
    %53 = vector.shape_cast %52 : vector<64xf32> to vector<64x1xf32>
    %54 = vector.broadcast %53 : vector<64x1xf32> to vector<64x64xf32>
    %55 = arith.subf %51, %54 : vector<64x64xf32>
    %56 = math.exp %55 : vector<64x64xf32>
    %57 = tpu.concatenate %47, %4 in 0 : vector<8x64xf32>, vector<1x64xf32> -> vector<9x64xf32>
    %58 = arith.truncf %57 : vector<9x64xf32> to vector<9x64xbf16>
    %59 = arith.truncf %56 : vector<64x64xf32> to vector<64x64xbf16>
    %cst_25 = arith.constant dense<0.000000e+00> : vector<9x64xf32>
    %60 = tpu.matmul %58, %59, %cst_25 {dimension_numbers = #tpu.dot_dimension_numbers<[1], [1], [0], [0], [0, 0, 1, 0], [], []>} : vector<9x64xbf16>, vector<64x64xbf16>, vector<9x64xf32> -> vector<9x64xf32>
    %61 = vector.extract_strided_slice %60 {offsets = [0, 0], sizes = [8, 64], strides = [1, 1]} : vector<9x64xf32> to vector<8x64xf32>
    %62 = arith.truncf %61 : vector<8x64xf32> to vector<8x64xbf16>
    %cst_26 = arith.constant dense<0.000000e+00> : vector<4x64xf32>
    %63 = tpu.matmul %2, %62, %cst_26 {dimension_numbers = #tpu.dot_dimension_numbers<[1], [0], [0], [1], [0, 0, 1, 1], [], []>} : vector<4x8xbf16>, vector<8x64xbf16>, vector<4x64xf32> -> vector<4x64xf32>
    %64 = vector.extract_strided_slice %60 {offsets = [8, 0], sizes = [1, 64], strides = [1, 1]} : vector<9x64xf32> to vector<1x64xf32>
    %65 = tpu.reciprocal %64 {approx = true} : vector<1x64xf32> -> vector<1x64xf32>
    %66 = vector.broadcast %65 : vector<1x64xf32> to vector<4x64xf32>
    %67 = arith.mulf %63, %66 : vector<4x64xf32>
    %68 = vector.broadcast %3 : vector<4x1xf32> to vector<4x64xf32>
    %69 = arith.addf %67, %68 : vector<4x64xf32>
    %c1_27 = arith.constant 1 : index
    %c0_28 = arith.constant 0 : index
    %c0_29 = arith.constant 0 : index
    %70 = vector.load %arg6[%c1_27, %c0_28, %c0_29] : memref<4x4x64xf32, #tpu.memory_space<vmem>>, vector<1x4x64xf32>
    %71 = vector.shape_cast %70 : vector<1x4x64xf32> to vector<4x64xf32>
    %72 = vector.shape_cast %69 : vector<4x64xf32> to vector<1x4x64xf32>
    tpu.vector_store %arg6[%c1_27, %c0_28, %c0_29], %72 {strides = array<i32>} : memref<4x4x64xf32, #tpu.memory_space<vmem>>, vector<1x4x64xf32>,
    %c2 = arith.constant 2 : index
    %c0_30 = arith.constant 0 : index
    %c0_31 = arith.constant 0 : index
    %73 = vector.load %arg1[%c2, %c0_30, %c0_31] : memref<4x4x64xbf16, #tpu.memory_space<vmem>>, vector<1x4x64xbf16>
    %74 = vector.shape_cast %73 : vector<1x4x64xbf16> to vector<4x64xbf16>
    %cst_32 = arith.constant dense<0.000000e+00> : vector<16x64xf32>
    %75 = tpu.matmul %0, %74, %cst_32 {dimension_numbers = #tpu.dot_dimension_numbers<[1], [0], [0], [1], [0, 0, 1, 1], [], []>} : vector<16x4xbf16>, vector<4x64xbf16>, vector<16x64xf32> -> vector<16x64xf32>
    %76 = vector.broadcast %1 : vector<16x1xf32> to vector<16x64xf32>
    %77 = arith.addf %75, %76 : vector<16x64xf32>
    %78 = vector.extract_strided_slice %77 {offsets = [0, 0], sizes = [8, 64], strides = [1, 1]} : vector<16x64xf32> to vector<8x64xf32>
    %cst_33 = arith.constant 0.000000e+00 : f32
    %79 = vector.broadcast %cst_33 : f32 to vector<8x64xf32>
    %80 = arith.maximumf %78, %79 : vector<8x64xf32>
    %81 = vector.extract_strided_slice %77 {offsets = [8, 0], sizes = [8, 64], strides = [1, 1]} : vector<16x64xf32> to vector<8x64xf32>
    %82 = arith.truncf %80 : vector<8x64xf32> to vector<8x64xbf16>
    %83 = tpu.transpose %80, [1, 0] : vector<8x64xf32> -> vector<64x8xf32>
    %84 = arith.truncf %83 : vector<64x8xf32> to vector<64x8xbf16>
    %cst_34 = arith.constant dense<0.000000e+00> : vector<64x64xf32>
    %85 = tpu.matmul %84, %82, %cst_34 {dimension_numbers = #tpu.dot_dimension_numbers<[1], [0], [0], [1], [0, 0, 1, 1], [], []>} : vector<64x8xbf16>, vector<8x64xbf16>, vector<64x64xf32> -> vector<64x64xf32>
    %cst_35 = arith.constant dense<0xFF800000> : vector<64xf32>
    %86 = vector.multi_reduction <maximumf>, %85, %cst_35 [1] : vector<64x64xf32> to vector<64xf32>
    %87 = vector.shape_cast %86 : vector<64xf32> to vector<64x1xf32>
    %88 = vector.broadcast %87 : vector<64x1xf32> to vector<64x64xf32>
    %89 = arith.subf %85, %88 : vector<64x64xf32>
    %90 = math.exp %89 : vector<64x64xf32>
    %91 = tpu.concatenate %81, %4 in 0 : vector<8x64xf32>, vector<1x64xf32> -> vector<9x64xf32>
    %92 = arith.truncf %91 : vector<9x64xf32> to vector<9x64xbf16>
    %93 = arith.truncf %90 : vector<64x64xf32> to vector<64x64xbf16>
    %cst_36 = arith.constant dense<0.000000e+00> : vector<9x64xf32>
    %94 = tpu.matmul %92, %93, %cst_36 {dimension_numbers = #tpu.dot_dimension_numbers<[1], [1], [0], [0], [0, 0, 1, 0], [], []>} : vector<9x64xbf16>, vector<64x64xbf16>, vector<9x64xf32> -> vector<9x64xf32>
    %95 = vector.extract_strided_slice %94 {offsets = [0, 0], sizes = [8, 64], strides = [1, 1]} : vector<9x64xf32> to vector<8x64xf32>
    %96 = arith.truncf %95 : vector<8x64xf32> to vector<8x64xbf16>
    %cst_37 = arith.constant dense<0.000000e+00> : vector<4x64xf32>
    %97 = tpu.matmul %2, %96, %cst_37 {dimension_numbers = #tpu.dot_dimension_numbers<[1], [0], [0], [1], [0, 0, 1, 1], [], []>} : vector<4x8xbf16>, vector<8x64xbf16>, vector<4x64xf32> -> vector<4x64xf32>
    %98 = vector.extract_strided_slice %94 {offsets = [8, 0], sizes = [1, 64], strides = [1, 1]} : vector<9x64xf32> to vector<1x64xf32>
    %99 = tpu.reciprocal %98 {approx = true} : vector<1x64xf32> -> vector<1x64xf32>
    %100 = vector.broadcast %99 : vector<1x64xf32> to vector<4x64xf32>
    %101 = arith.mulf %97, %100 : vector<4x64xf32>
    %102 = vector.broadcast %3 : vector<4x1xf32> to vector<4x64xf32>
    %103 = arith.addf %101, %102 : vector<4x64xf32>
    %c2_38 = arith.constant 2 : index
    %c0_39 = arith.constant 0 : index
    %c0_40 = arith.constant 0 : index
    %104 = vector.load %arg6[%c2_38, %c0_39, %c0_40] : memref<4x4x64xf32, #tpu.memory_space<vmem>>, vector<1x4x64xf32>
    %105 = vector.shape_cast %104 : vector<1x4x64xf32> to vector<4x64xf32>
    %106 = vector.shape_cast %103 : vector<4x64xf32> to vector<1x4x64xf32>
    tpu.vector_store %arg6[%c2_38, %c0_39, %c0_40], %106 {strides = array<i32>} : memref<4x4x64xf32, #tpu.memory_space<vmem>>, vector<1x4x64xf32>,
    %c3 = arith.constant 3 : index
    %c0_41 = arith.constant 0 : index
    %c0_42 = arith.constant 0 : index
    %107 = vector.load %arg1[%c3, %c0_41, %c0_42] : memref<4x4x64xbf16, #tpu.memory_space<vmem>>, vector<1x4x64xbf16>
    %108 = vector.shape_cast %107 : vector<1x4x64xbf16> to vector<4x64xbf16>
    %cst_43 = arith.constant dense<0.000000e+00> : vector<16x64xf32>
    %109 = tpu.matmul %0, %108, %cst_43 {dimension_numbers = #tpu.dot_dimension_numbers<[1], [0], [0], [1], [0, 0, 1, 1], [], []>} : vector<16x4xbf16>, vector<4x64xbf16>, vector<16x64xf32> -> vector<16x64xf32>
    %110 = vector.broadcast %1 : vector<16x1xf32> to vector<16x64xf32>
    %111 = arith.addf %109, %110 : vector<16x64xf32>
    %112 = vector.extract_strided_slice %111 {offsets = [0, 0], sizes = [8, 64], strides = [1, 1]} : vector<16x64xf32> to vector<8x64xf32>
    %cst_44 = arith.constant 0.000000e+00 : f32
    %113 = vector.broadcast %cst_44 : f32 to vector<8x64xf32>
    %114 = arith.maximumf %112, %113 : vector<8x64xf32>
    %115 = vector.extract_strided_slice %111 {offsets = [8, 0], sizes = [8, 64], strides = [1, 1]} : vector<16x64xf32> to vector<8x64xf32>
    %116 = arith.truncf %114 : vector<8x64xf32> to vector<8x64xbf16>
    %117 = tpu.transpose %114, [1, 0] : vector<8x64xf32> -> vector<64x8xf32>
    %118 = arith.truncf %117 : vector<64x8xf32> to vector<64x8xbf16>
    %cst_45 = arith.constant dense<0.000000e+00> : vector<64x64xf32>
    %119 = tpu.matmul %118, %116, %cst_45 {dimension_numbers = #tpu.dot_dimension_numbers<[1], [0], [0], [1], [0, 0, 1, 1], [], []>} : vector<64x8xbf16>, vector<8x64xbf16>, vector<64x64xf32> -> vector<64x64xf32>
    %cst_46 = arith.constant dense<0xFF800000> : vector<64xf32>
    %120 = vector.multi_reduction <maximumf>, %119, %cst_46 [1] : vector<64x64xf32> to vector<64xf32>
    %121 = vector.shape_cast %120 : vector<64xf32> to vector<64x1xf32>
    %122 = vector.broadcast %121 : vector<64x1xf32> to vector<64x64xf32>
    %123 = arith.subf %119, %122 : vector<64x64xf32>
    %124 = math.exp %123 : vector<64x64xf32>
    %125 = tpu.concatenate %115, %4 in 0 : vector<8x64xf32>, vector<1x64xf32> -> vector<9x64xf32>
    %126 = arith.truncf %125 : vector<9x64xf32> to vector<9x64xbf16>
    %127 = arith.truncf %124 : vector<64x64xf32> to vector<64x64xbf16>
    %cst_47 = arith.constant dense<0.000000e+00> : vector<9x64xf32>
    %128 = tpu.matmul %126, %127, %cst_47 {dimension_numbers = #tpu.dot_dimension_numbers<[1], [1], [0], [0], [0, 0, 1, 0], [], []>} : vector<9x64xbf16>, vector<64x64xbf16>, vector<9x64xf32> -> vector<9x64xf32>
    %129 = vector.extract_strided_slice %128 {offsets = [0, 0], sizes = [8, 64], strides = [1, 1]} : vector<9x64xf32> to vector<8x64xf32>
    %130 = arith.truncf %129 : vector<8x64xf32> to vector<8x64xbf16>
    %cst_48 = arith.constant dense<0.000000e+00> : vector<4x64xf32>
    %131 = tpu.matmul %2, %130, %cst_48 {dimension_numbers = #tpu.dot_dimension_numbers<[1], [0], [0], [1], [0, 0, 1, 1], [], []>} : vector<4x8xbf16>, vector<8x64xbf16>, vector<4x64xf32> -> vector<4x64xf32>
    %132 = vector.extract_strided_slice %128 {offsets = [8, 0], sizes = [1, 64], strides = [1, 1]} : vector<9x64xf32> to vector<1x64xf32>
    %133 = tpu.reciprocal %132 {approx = true} : vector<1x64xf32> -> vector<1x64xf32>
    %134 = vector.broadcast %133 : vector<1x64xf32> to vector<4x64xf32>
    %135 = arith.mulf %131, %134 : vector<4x64xf32>
    %136 = vector.broadcast %3 : vector<4x1xf32> to vector<4x64xf32>
    %137 = arith.addf %135, %136 : vector<4x64xf32>
    %c3_49 = arith.constant 3 : index
    %c0_50 = arith.constant 0 : index
    %c0_51 = arith.constant 0 : index
    %138 = vector.load %arg6[%c3_49, %c0_50, %c0_51] : memref<4x4x64xf32, #tpu.memory_space<vmem>>, vector<1x4x64xf32>
    %139 = vector.shape_cast %138 : vector<1x4x64xf32> to vector<4x64xf32>
    %140 = vector.shape_cast %137 : vector<4x64xf32> to vector<1x4x64xf32>
    tpu.vector_store %arg6[%c3_49, %c0_50, %c0_51], %140 {strides = array<i32>} : memref<4x4x64xf32, #tpu.memory_space<vmem>>, vector<1x4x64xf32>,
    return
  }
  func.func @transform_0(%arg0: i32) -> (i32, i32, i32) {
    %c0_i32 = arith.constant 0 : i32
    %c0_i32_0 = arith.constant 0 : i32
    %c0_i32_1 = arith.constant 0 : i32
    return %arg0, %c0_i32, %c0_i32_0 : i32, i32, i32
  }
  func.func @transform_1(%arg0: i32) -> (i32, i32) {
    %c0_i32 = arith.constant 0 : i32
    %c0_i32_0 = arith.constant 0 : i32
    %c0_i32_1 = arith.constant 0 : i32
    return %c0_i32, %c0_i32_0 : i32, i32
  }
  func.func @transform_2(%arg0: i32) -> (i32, i32) {
    %c0_i32 = arith.constant 0 : i32
    %c0_i32_0 = arith.constant 0 : i32
    %c0_i32_1 = arith.constant 0 : i32
    return %c0_i32, %c0_i32_0 : i32, i32
  }
  func.func @transform_3(%arg0: i32) -> (i32, i32) {
    %c0_i32 = arith.constant 0 : i32
    %c0_i32_0 = arith.constant 0 : i32
    %c0_i32_1 = arith.constant 0 : i32
    return %c0_i32, %c0_i32_0 : i32, i32
  }
  func.func @transform_4(%arg0: i32) -> (i32, i32) {
    %c0_i32 = arith.constant 0 : i32
    %c0_i32_0 = arith.constant 0 : i32
    %c0_i32_1 = arith.constant 0 : i32
    return %c0_i32, %c0_i32_0 : i32, i32
  }
  func.func @transform_5(%arg0: i32) -> (i32, i32, i32) {
    %c0_i32 = arith.constant 0 : i32
    %c0_i32_0 = arith.constant 0 : i32
    %c0_i32_1 = arith.constant 0 : i32
    return %arg0, %c0_i32, %c0_i32_0 : i32, i32, i32
  }
}

</mosaic_0001>

<bundles_post_ra>
// kernel: pyramid_self_attention.1
= control target key start
LH: loop header
LB: loop body
LE: loop exit
PB: predicated region body
PF: predicated region fallthrough
CT: control target
= control target key end

     0   :  { %s1996_s18 = smov 0   ;;  %s2243_s0 = inlined_call_operand.vmem [shape: bf16[8,4,64], index: 0, kind: input, shape index: {}]   ;;  %s2244_s1 = inlined_call_operand.vmem [shape: bf16[16,4], index: 1, kind: input, shape index: {}]   ;;  %s2245_s2 = inlined_call_operand.vmem [shape: f32[16,1], index: 2, kind: input, shape index: {}]   ;;  %s2246_s3 = inlined_call_operand.vmem [shape: bf16[4,8], index: 3, kind: input, shape index: {}]   ;;  %s2247_s4 = inlined_call_operand.vmem [shape: f32[4,1], index: 4, kind: input, shape index: {}]   ;;  %s2248_s5 = inlined_call_operand.vmem [shape: f32[8,4,64], index: 5, kind: output, shape index: {}]  }
   0x1 LB: > { %s1625_s19 = sadd.s32 4294967295, %s1960_s18   ;;  %p1629_p0 = scmp.ge.s32.totalorder %s1960_s18, 1  ;;  %s1960_s18 = sphi %s1996_s18, %s15_s18  }
   0x2   : > { %p188_p1 = scmp.lt.s32.totalorder %s1960_s18, 3 }
   0x4   : > { %p189_p2 = pnand %p1629_p0, %p188_p1 }
   0x5   : > { %s1630_s20 = sshll.u32 (!%p189_p2), %s1625_s19, 2 }
   0x6   : > { %192 = sbr.rel (%p189_p2) target bundleno = 4002 (0xfa2), region = 40  ;;  %p217_p3 = scmp.lt.s32.totalorder (!%p189_p2), %s1630_s20, 7 }
   0xb   : > { %v1962_v0 = vmov 0.0   ;;  %vm1963_vm0 = vmmov 0   ;;  %v1964_v1 = vmov 0   ;;  %v231_v2 = vld [vmem:[%s2245_s2] sm:$0xff]  ;;  %s2250_s20 = smov (!%p217_p3, %s1630_s20), 7  ;;  %vm255_vm1 = vcmask 1041408  }
   0xc   : > { %1727 = vmatprep.subr.bf16.mxu1 %v1962_v0  ;;  %1729 = vmatprep.mubr.msk.bf16.mxu1 %vm1963_vm0, %v1962_v0  ;;  %s1631_s23 = sshll.u32 %s2250_s20, 1  ;;  %v2026_v5 = vld [vmem:[%s2244_s1] sm:$0xff]   ;;  %vm251_vm2 = vcmask 31744   ;;  %vm351_vm3 = vcmask 1043456   ;;  %vm338_vm4 = vcmask 64512   ;;  %vm420_vm5 = vcmask 523264  }
   0xd   : > { %1879 = vset.pattern.permute.xlu0 %v1964_v1  ;;  %1880 = vset.pattern.permute.xlu1 %v1964_v1  ;;  %s2019_s26 = scalar_lea.vmem %s2243_s0, %s1631_s23  ;;  %v232_v43 = vld [vmem:[%s2245_s2 + $0x8] sm:$0xff]  ;;  %s1633_s10 = sshll.u32 %s2250_s20, 2  ;;  %vm589_vm6 = vcmask 519168  }
   0xe   : > { %238 = vperm.xlu0 %1879, %v231_v2   ;;  %1743 = vmatprep.subr.bf16.mxu0 %v1962_v0  ;;  %v235_v3 = vld [vmem:[%s2019_s26] sm:$0x3]  ;;  %s2214_s13 = scalar_lea.vmem %s2248_s5, %s1633_s10 }
   0xf   : > { %1751 = vmatprep.mubr.msk.bf16.mxu0 %vm1963_vm0, %v1962_v0  ;;  %v257_v4 = vsel %vm255_vm1, %v235_v3, 0 }
  0x10   : > { %1728 = vmatpush3.bf16.msra.mxu1 %v257_v4 }
  0x13   : > { %1730 = vmatmul.mubr.msk.bf16.vlgmr.msra.gmra.mxu1 %vm251_vm2, %v2026_v5 }
  0x89   : > { %v2030_v6 = vpop.permute.xlu0 %238 }
  0xd3   : > { %v293_v7 = vpop.f32.mrf.mxu1 }
  0xd4   : > { %v294_v8 = vadd.f32 %v293_v7, %v2030_v6 }
  0xd5   : > { %v1731_v9 = vpop.f32.mrf.mxu1 }
  0xd6   : > { %v300_v10 = vmax.f32 %v294_v8, 0.0 }
  0xd7   : > { %v2033_v11 = vpop.f32.mrf.mxu1 }
  0xd8   : > { %v301_v12 = vpack.c.bf16 %v300_v10, %v300_v10  ;;  %302 = vxpose.xlu0.b32.start.end [1/1] (short) (narrow) %v300_v10, 64 }
  0xd9   : > { %v1732_v13 = vpop.f32.mrf.mxu1 }
  0xda   : > { %1863 = vmatprep.subr.msk.bf16.mxu1 %vm351_vm3, %v301_v12  ;;  %v353_v14 = vsel %vm351_vm3, %v301_v12, 0 }
  0xdb   : > { %1734 = vmatpush3.bf16.msra.mxu1 %v353_v14 }
  0xdc   : > { %1755 = vmatprep.subr.bf16.mxu1 %v1962_v0 }
 0x154   : > { %v318_v15 = vpop.trf.xlu0 }
 0x158   : > { %v319_v16 = vpop.trf.xlu0 }
 0x159   : > { %v334_v17 = vpack.c.bf16 %v319_v16, %v318_v15 }
 0x15b   : > { %1735 = vmatprep.mubr.msk.bf16.mxu1 %vm338_vm4, %v334_v17 }
 0x15c   : > { %v320_v18 = vpop.trf.xlu0 }
 0x160   : > { %v321_v19 = vpop.trf.xlu0 }
 0x161   : > { %v335_v20 = vpack.c.bf16 %v321_v19, %v320_v18 }
 0x163   : > { %1736 = vmatmul.mubr.msk.bf16.vlgmr.msra.gmra.mxu1 %vm338_vm4, %v335_v20 }
 0x164   : > { %v322_v21 = vpop.trf.xlu0 }
 0x168   : > { %v323_v22 = vpop.trf.xlu0 }
 0x169   : > { %v336_v23 = vpack.c.bf16 %v323_v22, %v322_v21 }
 0x16b   : > { %1739 = vmatprep.mubr.msk.bf16.mxu1 %vm338_vm4, %v336_v23 }
 0x16c   : > { %v324_v24 = vpop.trf.xlu0 }
 0x170   : > { %v325_v25 = vpop.trf.xlu0 }
 0x171   : > { %v337_v26 = vpack.c.bf16 %v325_v25, %v324_v24 }
 0x173   : > { %1740 = vmatmul.mubr.msk.bf16.gmra.mxu1 %vm338_vm4, %v337_v26  ;;  %v1965_v26 = vmov 1.0  }
 0x174   : > { %1757 = vmatprep.mubr.msk.bf16.mxu1 %vm1963_vm0, %v1962_v0 }
 0x223   : > { %v1737_v27 = vpop.f32.mrf.mxu1 }
 0x224   : > { %v427_v37 = vsel %vm420_vm5, %v1737_v27, -inf }
 0x225   : > { %v389_v28 = vpop.f32.mrf.mxu1 }
 0x226   : > { %v421_v41 = vsel %vm420_vm5, %v389_v28, -inf }
 0x227   : > { %v1738_v29 = vpop.f32.mrf.mxu1 }
 0x228   : > { %v430_v40 = vsel %vm420_vm5, %v1738_v29, -inf }
 0x229   : > { %v392_v30 = vpop.f32.mrf.mxu1 }
 0x22a   : > { %v424_v42 = vsel %vm420_vm5, %v392_v30, -inf }
 0x233   : > { %v1741_v31 = vpop.f32.mrf.mxu1 }
 0x234   : > { %v439_v32 = vsel %vm420_vm5, %v1741_v31, -inf }
 0x235   : > { %440 = vmax.xlane.f32.xlu1 %v439_v32  ;;  %v405_v33 = vpop.f32.mrf.mxu1 }
 0x236   : > { %v433_v34 = vsel %vm420_vm5, %v405_v33, -inf }
 0x237   : > { %v1742_v35 = vpop.f32.mrf.mxu1 }
 0x238   : > { %v442_v36 = vsel %vm420_vm5, %v1742_v35, -inf }
 0x239   : > { %434 = vmax.xlane.f32.xlu1 %v433_v34  ;;  %v408_v38 = vpop.f32.mrf.mxu1 }
 0x23a   : > { %v436_v39 = vsel %vm420_vm5, %v408_v38, -inf }
 0x23d   : > { %443 = vmax.xlane.f32.xlu1 %v442_v36  ;;  %v578_v36 = vlaneseq }
 0x241   : > { %428 = vmax.xlane.f32.xlu1 %v427_v37  ;;  %v579_v37 = vshrl.u32 %v578_v36, 7 }
 0x245   : > { %437 = vmax.xlane.f32.xlu1 %v436_v39 }
 0x249   : > { %431 = vmax.xlane.f32.xlu1 %v430_v40 }
 0x24d   : > { %422 = vmax.xlane.f32.xlu1 %v421_v41 }
 0x251   : > { %425 = vmax.xlane.f32.xlu1 %v424_v42 }
 0x262   : > { %243 = vperm.xlu1 %1880, %v232_v43  }
 0x2be   : > { %v441_v44 = vpop.xlane.xlu1 %440 }
 0x2bf   : > { %v451_v45 = vsub.f32 %v1741_v31, %v441_v44  ;;  %v1642_v31 = vld [vmem:[%s2019_s26 + $0x2] sm:$0x3] }
 0x2c0   : > { %v594_v34 = vsel %vm255_vm1, %v1642_v31, 0 }
 0x2c1   : > { %v465_v47 = vmul.f32 1.442695, %v451_v45 }
 0x2c2   : > { %v435_v46 = vpop.xlane.xlu1 %434 }
 0x2c3   : > { %1882 = vpow2.f32 %v465_v47  ;;  %v449_v51 = vsub.f32 %v405_v33, %v435_v46 }
 0x2c5   : > { %v461_v53 = vmul.f32 1.442695, %v449_v51 }
 0x2c6   : > { %v444_v48 = vpop.xlane.xlu1 %443 }
 0x2c7   : > { %v452_v49 = vsub.f32 %v1742_v35, %v444_v48 }
 0x2c9   : > { %v467_v50 = vmul.f32 1.442695, %v452_v49 }
 0x2ca   : > { %v429_v52 = vpop.xlane.xlu1 %428 }
 0x2cb   : > { %1884 = vpow2.f32 %v467_v50  ;;  %v447_v56 = vsub.f32 %v1737_v27, %v429_v52 }
 0x2cc   : > { %1886 = vpow2.f32 %v461_v53 }
 0x2cd   : > { %v457_v60 = vmul.f32 1.442695, %v447_v56 }
 0x2ce   : > { %v438_v54 = vpop.xlane.xlu1 %437 }
 0x2cf   : > { %v450_v55 = vsub.f32 %v408_v38, %v438_v54  ;;  %v2086_v38 = vsub.s32 0, %v579_v37 }
 0x2d0   : > { %v1883_v63 = vpop.eup %1882 }
 0x2d1   : > { %v463_v57 = vmul.f32 1.442695, %v450_v55 }
 0x2d2   : > { %v432_v58 = vpop.xlane.xlu1 %431 }
 0x2d3   : > { %1888 = vpow2.f32 %v463_v57  ;;  %v448_v59 = vsub.f32 %v1738_v29, %v432_v58 }
 0x2d5   : > { %v459_v61 = vmul.f32 1.442695, %v448_v59 }
 0x2d6   : > { %v423_v62 = vpop.xlane.xlu1 %422 }
 0x2d7   : > { %1890 = vpow2.f32 %v459_v61  ;;  %v445_v2 = vsub.f32 %v389_v28, %v423_v62 }
 0x2d8   : > { %v1885_v1 = vpop.eup %1884  ;;  %1892 = vpow2.f32 %v457_v60 }
 0x2d9   : > { %v473_v3 = vpack.c.bf16 %v1885_v1, %v1883_v63  ;;  %v453_v9 = vmul.f32 1.442695, %v445_v2  ;;  %v1887_v12 = vpop.eup %1886 }
 0x2da   : > { %v426_v4 = vpop.xlane.xlu1 %425 }
 0x2db   : > { %v446_v7 = vsub.f32 %v392_v30, %v426_v4  ;;  %v487_v8 = vsel %vm420_vm5, %v473_v3, 0 }
 0x2dc   : > { %1744 = vmatpush3.bf16.xpose.msra.mxu0 %v487_v8 }
 0x2dd   : > { %v455_v10 = vmul.f32 1.442695, %v446_v7  ;;  %1745 = vmatprep.subr.bf16.mxu0 %v1962_v0 }
 0x2de   : > { %v2061_v23 = vpop.permute.xlu1 %243 }
 0x2df   : > { %1894 = vpow2.f32 %v455_v10  ;;  %v297_v25 = vadd.f32 %v2033_v11, %v2061_v23  ;;  %v2076_v11 = vld [vmem:[%s2246_s3] sm:$0x3] }
 0x2e0   : > { %v1889_v13 = vpop.eup %1888  ;;  %1896 = vpow2.f32 %v453_v9 }
 0x2e1   : > { %v472_v14 = vpack.c.bf16 %v1889_v13, %v1887_v12  ;;  %v469_v27 = vpack.c.bf16 %v1965_v26, %v297_v25 }
 0x2e3   : > { %v484_v15 = vsel %vm420_vm5, %v472_v14, 0 }
 0x2e4   : > { %v1891_v16 = vpop.eup %1890  ;;  %1746 = vmatpush3.bf16.xpose.msra.mxu0 %v484_v15 }
 0x2e5   : > { %1747 = vmatprep.subr.bf16.mxu0 %v1962_v0  ;;  %v1893_v17 = vpop.eup %1892 }
 0x2e6   : > { %v471_v18 = vpack.c.bf16 %v1891_v16, %v1893_v17 }
 0x2e8   : > { %v481_v19 = vsel %vm420_vm5, %v471_v18, 0 }
 0x2ec   : > { %v1895_v20 = vpop.eup %1894  ;;  %1748 = vmatpush3.bf16.xpose.msra.mxu0 %v481_v19 }
 0x2ed   : > { %1749 = vmatprep.subr.bf16.mxu0 %v1962_v0  ;;  %v1897_v21 = vpop.eup %1896 }
 0x2ee   : > { %v470_v22 = vpack.c.bf16 %v1895_v20, %v1897_v21 }
 0x2f0   : > { %v478_v24 = vsel %vm420_vm5, %v470_v22, 0 }
 0x2f4   : > { %1750 = vmatpush3.bf16.xpose.msra.mxu0 %v478_v24 }
 0x2f5   : > { %1777 = vmatprep.subr.bf16.mxu0 %v1962_v0 }
 0x2fb   : > { %1752 = vmatmul.mubr.msk.bf16.vlgmr.msra.gmra.mxu0 %vm420_vm5, %v469_v27 }
 0x2fc   : > { %1785 = vmatprep.mubr.msk.bf16.mxu0 %vm1963_vm0, %v1962_v0 }
 0x3bb   : > { %v523_v28 = vpop.f32.mrf.mxu0 }
 0x3bc   : > { %v530_v29 = vpack.c.bf16 %v523_v28, %v523_v28 }
 0x3bd   : > { %v1753_v30 = vpop.f32.mrf.mxu0 }
 0x3be   : > { %v535_v32 = vsel %vm351_vm3, %v530_v29, 0 }
 0x3bf   : > { %v526_v33 = vpop.f32.mrf.mxu0  ;;  %1756 = vmatpush3.bf16.msra.mxu1 %v535_v32 }
 0x3c0   : > { %1761 = vmatprep.subr.bf16.mxu1 %v1962_v0  ;;  %1898 = vrcp.f32 %v526_v33 }
 0x3c1   : > { %v1754_v35 = vpop.f32.mrf.mxu0 }
 0x3c2   : > { %1758 = vmatmul.mubr.msk.bf16.vlgmr.msra.gmra.mxu1 %vm338_vm4, %v2076_v11 }
 0x3c3   : > { %1762 = vmatpush3.bf16.msra.mxu1 %v594_v34  ;;  %1763 = vmatprep.mubr.msk.bf16.mxu1 %vm1963_vm0, %v1962_v0 }
 0x3ca   : > { %1764 = vmatmul.mubr.msk.bf16.vlgmr.msra.gmra.mxu1 %vm251_vm2, %v2026_v5 }
 0x3cd   : > { %v1899_v39 = vpop.eup %1898 }
 0x3ce   : > { %v581_v40 = vrot.slane %v1899_v39, %v2086_v38 }
 0x482   : > { %v571_v41 = vpop.f32.mrf.mxu1 }
 0x483   : > { %v2089_v42 = vmul.f32 %v581_v40, %v571_v41 }
 0x484   : > { %v1759_v43 = vpop.f32.mrf.mxu1 }
 0x486   : > { %v574_v44 = vpop.f32.mrf.mxu1 }
 0x488   : > { %v1760_v45 = vpop.f32.mrf.mxu1 }
 0x48a   : > { %v630_v46 = vpop.f32.mrf.mxu1 }
 0x48b   : > { %v631_v47 = vadd.f32 %v630_v46, %v2030_v6 }
 0x48c   : > { %v1765_v48 = vpop.f32.mrf.mxu1 }
 0x48d   : > { %v637_v49 = vmax.f32 %v631_v47, 0.0 }
 0x48e   : > { %v2092_v50 = vpop.f32.mrf.mxu1 }
 0x48f   : > { %v638_v51 = vpack.c.bf16 %v637_v49, %v637_v49  ;;  %639 = vxpose.xlu0.b32.start.end [1/1] (short) (narrow) %v637_v49, 64 }
 0x490   : > { %v1766_v52 = vpop.f32.mrf.mxu1 }
 0x491   : > { %1864 = vmatprep.subr.msk.bf16.mxu1 %vm351_vm3, %v638_v51  ;;  %v688_v53 = vsel %vm351_vm3, %v638_v51, 0 }
 0x492   : > { %1768 = vmatpush3.bf16.msra.mxu1 %v688_v53 }
 0x493   : > { %1789 = vmatprep.subr.bf16.mxu1 %v1962_v0 }
 0x50b   : > { %v655_v54 = vpop.trf.xlu0 }
 0x50f   : > { %v656_v55 = vpop.trf.xlu0 }
 0x510   : > { %v671_v56 = vpack.c.bf16 %v656_v55, %v655_v54 }
 0x512   : > { %1769 = vmatprep.mubr.msk.bf16.mxu1 %vm338_vm4, %v671_v56 }
 0x513   : > { %v657_v57 = vpop.trf.xlu0 }
 0x517   : > { %v658_v58 = vpop.trf.xlu0 }
 0x518   : > { %v672_v59 = vpack.c.bf16 %v658_v58, %v657_v57 }
 0x51a   : > { %1770 = vmatmul.mubr.msk.bf16.vlgmr.msra.gmra.mxu1 %vm338_vm4, %v672_v59 }
 0x51b   : > { %v659_v60 = vpop.trf.xlu0 }
 0x51f   : > { %v660_v61 = vpop.trf.xlu0 }
 0x520   : > { %v673_v62 = vpack.c.bf16 %v660_v61, %v659_v60 }
 0x522   : > { %1773 = vmatprep.mubr.msk.bf16.mxu1 %vm338_vm4, %v673_v62 }
 0x523   : > { %v661_v63 = vpop.trf.xlu0 }
 0x527   : > { %v662_v1 = vpop.trf.xlu0 }
 0x528   : > { %v674_v2 = vpack.c.bf16 %v662_v1, %v661_v63 }
 0x52a   : > { %1774 = vmatmul.mubr.msk.bf16.gmra.mxu1 %vm338_vm4, %v674_v2 }
 0x52b   : > { %1791 = vmatprep.mubr.msk.bf16.mxu1 %vm1963_vm0, %v1962_v0 }
 0x5da   : > { %v1771_v3 = vpop.f32.mrf.mxu1 }
 0x5db   : > { %v761_v18 = vsel %vm420_vm5, %v1771_v3, -inf }
 0x5dc   : > { %v724_v4 = vpop.f32.mrf.mxu1 }
 0x5dd   : > { %v755_v20 = vsel %vm420_vm5, %v724_v4, -inf }
 0x5de   : > { %v1772_v7 = vpop.f32.mrf.mxu1 }
 0x5df   : > { %v764_v19 = vsel %vm420_vm5, %v1772_v7, -inf }
 0x5e0   : > { %v727_v8 = vpop.f32.mrf.mxu1 }
 0x5e1   : > { %v758_v21 = vsel %vm420_vm5, %v727_v8, -inf }
 0x5ea   : > { %v1775_v9 = vpop.f32.mrf.mxu1 }
 0x5eb   : > { %v773_v10 = vsel %vm420_vm5, %v1775_v9, -inf }
 0x5ec   : > { %774 = vmax.xlane.f32.xlu1 %v773_v10  ;;  %v740_v12 = vpop.f32.mrf.mxu1 }
 0x5ed   : > { %v767_v14 = vsel %vm420_vm5, %v740_v12, -inf }
 0x5ee   : > { %v1776_v13 = vpop.f32.mrf.mxu1 }
 0x5ef   : > { %v776_v15 = vsel %vm420_vm5, %v1776_v13, -inf }
 0x5f0   : > { %768 = vmax.xlane.f32.xlu1 %v767_v14  ;;  %777 = vmax.xlane.f32.xlu0 %v776_v15  ;;  %v743_v16 = vpop.f32.mrf.mxu1 }
 0x5f1   : > { %v770_v17 = vsel %vm420_vm5, %v743_v16, -inf }
 0x5f4   : > { %771 = vmax.xlane.f32.xlu1 %v770_v17 }
 0x5f8   : > { %762 = vmax.xlane.f32.xlu1 %v761_v18 }
 0x5fc   : > { %765 = vmax.xlane.f32.xlu1 %v764_v19 }
 0x600   : > { %756 = vmax.xlane.f32.xlu1 %v755_v20 }
 0x604   : > { %759 = vmax.xlane.f32.xlu1 %v758_v21 }
 0x675   : > { %v775_v22 = vpop.xlane.xlu1 %774 }
 0x676   : > { %v785_v24 = vsub.f32 %v1775_v9, %v775_v22 }
 0x678   : > { %v799_v28 = vmul.f32 1.442695, %v785_v24 }
 0x679   : > { %v769_v25 = vpop.xlane.xlu1 %768  ;;  %v778_v27 = vpop.xlane.xlu0 %777 }
 0x67a   : > { %v786_v29 = vsub.f32 %v1776_v13, %v778_v27  ;;  %v783_v31 = vsub.f32 %v740_v12, %v769_v25  ;;  %1900 = vpow2.f32 %v799_v28  ;;  %v1651_v12 = vld [vmem:[%s2019_s26 + $0x4] sm:$0x3] }
 0x67c   : > { %v801_v30 = vmul.f32 1.442695, %v786_v29  ;;  %v795_v35 = vmul.f32 1.442695, %v783_v31 }
 0x67d   : > { %v772_v32 = vpop.xlane.xlu1 %771 }
 0x67e   : > { %v784_v33 = vsub.f32 %v743_v16, %v772_v32  ;;  %1902 = vpow2.f32 %v801_v30 }
 0x680   : > { %v797_v34 = vmul.f32 1.442695, %v784_v33 }
 0x681   : > { %v763_v36 = vpop.xlane.xlu1 %762 }
 0x682   : > { %1904 = vpow2.f32 %v797_v34  ;;  %v781_v37 = vsub.f32 %v1771_v3, %v763_v36 }
 0x683   : > { %1906 = vpow2.f32 %v795_v35 }
 0x684   : > { %v791_v43 = vmul.f32 1.442695, %v781_v37 }
 0x685   : > { %v766_v39 = vpop.xlane.xlu1 %765 }
 0x686   : > { %v782_v40 = vsub.f32 %v1772_v7, %v766_v39 }
 0x687   : > { %v1901_v45 = vpop.eup %1900 }
 0x688   : > { %v793_v41 = vmul.f32 1.442695, %v782_v40 }
 0x689   : > { %v757_v44 = vpop.xlane.xlu1 %756 }
 0x68a   : > { %1908 = vpow2.f32 %v793_v41  ;;  %v779_v47 = vsub.f32 %v724_v4, %v757_v44  ;;  %v634_v4 = vadd.f32 %v2092_v50, %v2061_v23  ;;  %v920_v50 = vsel %vm255_vm1, %v1651_v12, 0 }
 0x68b   : > { %v1903_v46 = vpop.eup %1902  ;;  %1910 = vpow2.f32 %v791_v43 }
 0x68c   : > { %v807_v49 = vpack.c.bf16 %v1903_v46, %v1901_v45  ;;  %v787_v55 = vmul.f32 1.442695, %v779_v47  ;;  %v803_v7 = vpack.c.bf16 %v1965_v26, %v634_v4 }
 0x68d   : > { %v760_v48 = vpop.xlane.xlu1 %759 }
 0x68e   : > { %v780_v51 = vsub.f32 %v727_v8, %v760_v48  ;;  %v821_v52 = vsel %vm420_vm5, %v807_v49, 0 }
 0x68f   : > { %v1905_v53 = vpop.eup %1904  ;;  %1778 = vmatpush3.bf16.xpose.msra.mxu0 %v821_v52 }
 0x690   : > { %v789_v54 = vmul.f32 1.442695, %v780_v51  ;;  %1779 = vmatprep.subr.bf16.mxu0 %v1962_v0  ;;  %v1907_v56 = vpop.eup %1906 }
 0x691   : > { %v806_v57 = vpack.c.bf16 %v1905_v53, %v1907_v56 }
 0x692   : > { %1912 = vpow2.f32 %v789_v54 }
 0x693   : > { %1914 = vpow2.f32 %v787_v55  ;;  %v818_v58 = vsel %vm420_vm5, %v806_v57, 0 }
 0x697   : > { %v1909_v59 = vpop.eup %1908  ;;  %1780 = vmatpush3.bf16.xpose.msra.mxu0 %v818_v58 }
 0x698   : > { %1781 = vmatprep.subr.bf16.mxu0 %v1962_v0  ;;  %v1911_v60 = vpop.eup %1910 }
 0x699   : > { %v805_v61 = vpack.c.bf16 %v1909_v59, %v1911_v60 }
 0x69b   : > { %v815_v62 = vsel %vm420_vm5, %v805_v61, 0 }
 0x69f   : > { %v1913_v63 = vpop.eup %1912  ;;  %1782 = vmatpush3.bf16.xpose.msra.mxu0 %v815_v62 }
 0x6a0   : > { %1783 = vmatprep.subr.bf16.mxu0 %v1962_v0  ;;  %v1915_v1 = vpop.eup %1914 }
 0x6a1   : > { %v804_v2 = vpack.c.bf16 %v1913_v63, %v1915_v1 }
 0x6a3   : > { %v812_v3 = vsel %vm420_vm5, %v804_v2, 0 }
 0x6a7   : > { %1784 = vmatpush3.bf16.xpose.msra.mxu0 %v812_v3 }
 0x6a8   : > { %1811 = vmatprep.subr.bf16.mxu0 %v1962_v0 }
 0x6ae   : > { %1786 = vmatmul.mubr.msk.bf16.vlgmr.msra.gmra.mxu0 %vm420_vm5, %v803_v7 }
 0x6af   : > { %1819 = vmatprep.mubr.msk.bf16.mxu0 %vm1963_vm0, %v1962_v0 }
 0x76e   : > { %v857_v8 = vpop.f32.mrf.mxu0 }
 0x76f   : > { %v864_v9 = vpack.c.bf16 %v857_v8, %v857_v8 }
 0x770   : > { %v1787_v10 = vpop.f32.mrf.mxu0 }
 0x771   : > { %v866_v13 = vsel %vm351_vm3, %v864_v9, 0 }
 0x772   : > { %v860_v14 = vpop.f32.mrf.mxu0  ;;  %1790 = vmatpush3.bf16.msra.mxu1 %v866_v13 }
 0x773   : > { %1795 = vmatprep.subr.bf16.mxu1 %v1962_v0  ;;  %1916 = vrcp.f32 %v860_v14 }
 0x774   : > { %v1788_v15 = vpop.f32.mrf.mxu0 }
 0x775   : > { %1792 = vmatmul.mubr.msk.bf16.vlgmr.msra.gmra.mxu1 %vm338_vm4, %v2076_v11 }
 0x776   : > { %1796 = vmatpush3.bf16.msra.mxu1 %v920_v50  ;;  %1797 = vmatprep.mubr.msk.bf16.mxu1 %vm1963_vm0, %v1962_v0 }
 0x77d   : > { %1798 = vmatmul.mubr.msk.bf16.vlgmr.msra.gmra.mxu1 %vm251_vm2, %v2026_v5 }
 0x780   : > { %v1917_v16 = vpop.eup %1916 }
 0x781   : > { %v912_v17 = vrot.slane %v1917_v16, %v2086_v38 }
 0x835   : > { %v902_v18 = vpop.f32.mrf.mxu1 }
 0x836   : > { %v2136_v19 = vmul.f32 %v912_v17, %v902_v18 }
 0x837   : > { %v1793_v20 = vpop.f32.mrf.mxu1 }
 0x839   : > { %v905_v21 = vpop.f32.mrf.mxu1 }
 0x83b   : > { %v1794_v22 = vpop.f32.mrf.mxu1 }
 0x83d   : > { %v956_v24 = vpop.f32.mrf.mxu1 }
 0x83e   : > { %v957_v25 = vadd.f32 %v956_v24, %v2030_v6 }
 0x83f   : > { %v1799_v27 = vpop.f32.mrf.mxu1 }
 0x840   : > { %v963_v28 = vmax.f32 %v957_v25, 0.0 }
 0x841   : > { %v2139_v29 = vpop.f32.mrf.mxu1 }
 0x842   : > { %v964_v30 = vpack.c.bf16 %v963_v28, %v963_v28  ;;  %965 = vxpose.xlu1.b32.start.end [1/1] (short) (narrow) %v963_v28, 64 }
 0x843   : > { %v1800_v31 = vpop.f32.mrf.mxu1 }
 0x844   : > { %1865 = vmatprep.subr.msk.bf16.mxu1 %vm351_vm3, %v964_v30  ;;  %v1014_v32 = vsel %vm351_vm3, %v964_v30, 0 }
 0x845   : > { %1802 = vmatpush3.bf16.msra.mxu1 %v1014_v32 }
 0x846   : > { %1823 = vmatprep.subr.bf16.mxu1 %v1962_v0 }
 0x8be   : > { %v981_v33 = vpop.trf.xlu1 }
 0x8c2   : > { %v982_v34 = vpop.trf.xlu1 }
 0x8c3   : > { %v997_v35 = vpack.c.bf16 %v982_v34, %v981_v33 }
 0x8c5   : > { %1803 = vmatprep.mubr.msk.bf16.mxu1 %vm338_vm4, %v997_v35 }
 0x8c6   : > { %v983_v36 = vpop.trf.xlu1 }
 0x8ca   : > { %v984_v37 = vpop.trf.xlu1 }
 0x8cb   : > { %v998_v39 = vpack.c.bf16 %v984_v37, %v983_v36 }
 0x8cd   : > { %1804 = vmatmul.mubr.msk.bf16.vlgmr.msra.gmra.mxu1 %vm338_vm4, %v998_v39 }
 0x8ce   : > { %v985_v40 = vpop.trf.xlu1 }
 0x8d2   : > { %v986_v41 = vpop.trf.xlu1 }
 0x8d3   : > { %v999_v43 = vpack.c.bf16 %v986_v41, %v985_v40 }
 0x8d5   : > { %1807 = vmatprep.mubr.msk.bf16.mxu1 %vm338_vm4, %v999_v43 }
 0x8d6   : > { %v987_v44 = vpop.trf.xlu1 }
 0x8da   : > { %v988_v45 = vpop.trf.xlu1 }
 0x8db   : > { %v1000_v46 = vpack.c.bf16 %v988_v45, %v987_v44 }
 0x8dd   : > { %1808 = vmatmul.mubr.msk.bf16.gmra.mxu1 %vm338_vm4, %v1000_v46 }
 0x8de   : > { %1825 = vmatprep.mubr.msk.bf16.mxu1 %vm1963_vm0, %v1962_v0 }
 0x98d   : > { %v1805_v47 = vpop.f32.mrf.mxu1 }
 0x98e   : > { %v1087_v61 = vsel %vm420_vm5, %v1805_v47, -inf }
 0x98f   : > { %v1050_v48 = vpop.f32.mrf.mxu1 }
 0x990   : > { %v1081_v63 = vsel %vm420_vm5, %v1050_v48, -inf }
 0x991   : > { %v1806_v49 = vpop.f32.mrf.mxu1 }
 0x992   : > { %v1090_v62 = vsel %vm420_vm5, %v1806_v49, -inf }
 0x993   : > { %v1053_v51 = vpop.f32.mrf.mxu1 }
 0x994   : > { %v1084_v52 = vsel %vm420_vm5, %v1053_v51, -inf }
 0x995   : > { %1085 = vmax.xlane.f32.xlu1 %v1084_v52 }
 0x99d   : > { %v1809_v53 = vpop.f32.mrf.mxu1 }
 0x99e   : > { %v1099_v54 = vsel %vm420_vm5, %v1809_v53, -inf }
 0x99f   : > { %1100 = vmax.xlane.f32.xlu0 %v1099_v54  ;;  %v1066_v55 = vpop.f32.mrf.mxu1 }
 0x9a0   : > { %v1093_v58 = vsel %vm420_vm5, %v1066_v55, -inf }
 0x9a1   : > { %v1810_v56 = vpop.f32.mrf.mxu1 }
 0x9a2   : > { %v1102_v57 = vsel %vm420_vm5, %v1810_v56, -inf }
 0x9a3   : > { %1103 = vmax.xlane.f32.xlu0 %v1102_v57  ;;  %v1069_v59 = vpop.f32.mrf.mxu1 }
 0x9a4   : > { %v1096_v60 = vsel %vm420_vm5, %v1069_v59, -inf }
 0x9a7   : > { %1094 = vmax.xlane.f32.xlu0 %v1093_v58 }
 0x9ab   : > { %1097 = vmax.xlane.f32.xlu0 %v1096_v60 }
 0x9af   : > { %1088 = vmax.xlane.f32.xlu0 %v1087_v61 }
 0x9b3   : > { %1091 = vmax.xlane.f32.xlu0 %v1090_v62 }
 0x9b7   : > { %1082 = vmax.xlane.f32.xlu0 %v1081_v63 }
 0xa1e   : > { %v1086_v17 = vpop.xlane.xlu1 %1085 }
 0xa1f   : > { %v1106_v25 = vsub.f32 %v1053_v51, %v1086_v17 }
 0xa21   : > { %v1115_v33 = vmul.f32 1.442695, %v1106_v25 }
 0xa28   : > { %v1101_v1 = vpop.xlane.xlu0 %1100 }
 0xa29   : > { %v1111_v2 = vsub.f32 %v1809_v53, %v1101_v1 }
 0xa2b   : > { %v1125_v3 = vmul.f32 1.442695, %v1111_v2 }
 0xa2c   : > { %v1104_v4 = vpop.xlane.xlu0 %1103 }
 0xa2d   : > { %v1112_v7 = vsub.f32 %v1810_v56, %v1104_v4  ;;  %1918 = vpow2.f32 %v1125_v3 }
 0xa2f   : > { %v1127_v8 = vmul.f32 1.442695, %v1112_v7 }
 0xa30   : > { %v1095_v9 = vpop.xlane.xlu0 %1094 }
 0xa31   : > { %1920 = vpow2.f32 %v1127_v8  ;;  %v1109_v10 = vsub.f32 %v1066_v55, %v1095_v9  ;;  %v1660_v55 = vld [vmem:[%s2019_s26 + $0x6] sm:$0x3] }
 0xa33   : > { %v1121_v12 = vmul.f32 1.442695, %v1109_v10 }
 0xa34   : > { %v1098_v13 = vpop.xlane.xlu0 %1097 }
 0xa35   : > { %v1110_v14 = vsub.f32 %v1069_v59, %v1098_v13  ;;  %1922 = vpow2.f32 %v1121_v12 }
 0xa37   : > { %v1123_v50 = vmul.f32 1.442695, %v1110_v14 }
 0xa38   : > { %v1089_v15 = vpop.xlane.xlu0 %1088 }
 0xa39   : > { %1924 = vpow2.f32 %v1123_v50  ;;  %v1107_v16 = vsub.f32 %v1805_v47, %v1089_v15 }
 0xa3a   : > { %v1919_v21 = vpop.eup %1918 }
 0xa3b   : > { %v1117_v18 = vmul.f32 1.442695, %v1107_v16 }
 0xa3c   : > { %v1092_v20 = vpop.xlane.xlu0 %1091 }
 0xa3d   : > { %v1108_v22 = vsub.f32 %v1806_v49, %v1092_v20  ;;  %1926 = vpow2.f32 %v1117_v18  ;;  %v960_v49 = vadd.f32 %v2139_v29, %v2061_v23  ;;  %v1246_v29 = vsel %vm255_vm1, %v1660_v55, 0 }
 0xa3e   : > { %v1921_v24 = vpop.eup %1920 }
 0xa3f   : > { %v1119_v27 = vmul.f32 1.442695, %v1108_v22  ;;  %v1133_v28 = vpack.c.bf16 %v1921_v24, %v1919_v21  ;;  %v1129_v51 = vpack.c.bf16 %v1965_v26, %v960_v49 }
 0xa40   : > { %v1083_v30 = vpop.xlane.xlu0 %1082 }
 0xa41   : > { %1928 = vpow2.f32 %v1119_v27  ;;  %v1105_v31 = vsub.f32 %v1050_v48, %v1083_v30  ;;  %v1147_v32 = vsel %vm420_vm5, %v1133_v28, 0 }
 0xa42   : > { %1812 = vmatpush3.bf16.xpose.msra.mxu0 %v1147_v32  ;;  %v1923_v35 = vpop.eup %1922 }
 0xa43   : > { %v1113_v34 = vmul.f32 1.442695, %v1105_v31  ;;  %1813 = vmatprep.subr.bf16.mxu0 %v1962_v0 }
 0xa45   : > { %1930 = vpow2.f32 %v1113_v34 }
 0xa46   : > { %v1925_v36 = vpop.eup %1924  ;;  %1932 = vpow2.f32 %v1115_v33 }
 0xa47   : > { %v1132_v37 = vpack.c.bf16 %v1925_v36, %v1923_v35 }
 0xa49   : > { %v1144_v39 = vsel %vm420_vm5, %v1132_v37, 0 }
 0xa4a   : > { %1814 = vmatpush3.bf16.xpose.msra.mxu0 %v1144_v39  ;;  %v1927_v40 = vpop.eup %1926 }
 0xa4b   : > { %1815 = vmatprep.subr.bf16.mxu0 %v1962_v0 }
 0xa4e   : > { %v1929_v41 = vpop.eup %1928 }
 0xa4f   : > { %v1131_v43 = vpack.c.bf16 %v1929_v41, %v1927_v40 }
 0xa51   : > { %v1141_v44 = vsel %vm420_vm5, %v1131_v43, 0 }
 0xa52   : > { %v1931_v45 = vpop.eup %1930  ;;  %1816 = vmatpush3.bf16.xpose.msra.mxu0 %v1141_v44 }
 0xa53   : > { %1817 = vmatprep.subr.bf16.mxu0 %v1962_v0  ;;  %v1933_v46 = vpop.eup %1932 }
 0xa54   : > { %v1130_v47 = vpack.c.bf16 %v1933_v46, %v1931_v45  ;;  %v234_v45 = vld [vmem:[%s2247_s4] sm:$0xf] }
 0xa56   : > { %v1138_v48 = vsel %vm420_vm5, %v1130_v47, 0 }
 0xa5a   : > { %1818 = vmatpush3.bf16.xpose.msra.mxu0 %v1138_v48 }
 0xa5b   : > { %1845 = vmatprep.subr.bf16.mxu0 %v1962_v0 }
 0xa61   : > { %1820 = vmatmul.mubr.msk.bf16.vlgmr.msra.gmra.mxu0 %vm420_vm5, %v1129_v51 }
 0xa62   : > { %1853 = vmatprep.mubr.msk.bf16.mxu0 %vm1963_vm0, %v1962_v0 }
 0xb21   : > { %v1183_v52 = vpop.f32.mrf.mxu0 }
 0xb22   : > { %v1190_v53 = vpack.c.bf16 %v1183_v52, %v1183_v52 }
 0xb23   : > { %v1821_v54 = vpop.f32.mrf.mxu0 }
 0xb24   : > { %v1192_v56 = vsel %vm351_vm3, %v1190_v53, 0 }
 0xb25   : > { %v1186_v57 = vpop.f32.mrf.mxu0  ;;  %1824 = vmatpush3.bf16.msra.mxu1 %v1192_v56 }
 0xb26   : > { %1829 = vmatprep.subr.bf16.mxu1 %v1962_v0  ;;  %1934 = vrcp.f32 %v1186_v57 }
 0xb27   : > { %v1822_v58 = vpop.f32.mrf.mxu0 }
 0xb28   : > { %1826 = vmatmul.mubr.msk.bf16.vlgmr.msra.gmra.mxu1 %vm338_vm4, %v2076_v11 }
 0xb29   : > { %1830 = vmatpush3.bf16.msra.mxu1 %v1246_v29  ;;  %1831 = vmatprep.mubr.msk.bf16.mxu1 %vm1963_vm0, %v1962_v0 }
 0xb30   : > { %1832 = vmatmul.mubr.msk.bf16.vlgmr.msra.gmra.mxu1 %vm251_vm2, %v2026_v5 }
 0xb33   : > { %v1935_v59 = vpop.eup %1934 }
 0xb34   : > { %v1238_v60 = vrot.slane %v1935_v59, %v2086_v38 }
 0xbe8   : > { %v1228_v61 = vpop.f32.mrf.mxu1 }
 0xbe9   : > { %v2183_v62 = vmul.f32 %v1238_v60, %v1228_v61 }
 0xbea   : > { %v1827_v63 = vpop.f32.mrf.mxu1 }
 0xbec   : > { %v1231_v1 = vpop.f32.mrf.mxu1 }
 0xbee   : > { %v1828_v2 = vpop.f32.mrf.mxu1 }
 0xbf0   : > { %v1282_v3 = vpop.f32.mrf.mxu1 }
 0xbf1   : > { %v1283_v4 = vadd.f32 %v1282_v3, %v2030_v6 }
 0xbf2   : > { %v1833_v7 = vpop.f32.mrf.mxu1 }
 0xbf3   : > { %v1289_v8 = vmax.f32 %v1283_v4, 0.0 }
 0xbf4   : > { %v2186_v9 = vpop.f32.mrf.mxu1 }
 0xbf5   : > { %v1290_v10 = vpack.c.bf16 %v1289_v8, %v1289_v8  ;;  %1291 = vxpose.xlu0.b32.start.end [1/1] (short) (narrow) %v1289_v8, 64 }
 0xbf6   : > { %v1834_v5 = vpop.f32.mrf.mxu1 }
 0xbf7   : > { %1866 = vmatprep.subr.msk.bf16.mxu1 %vm351_vm3, %v1290_v10  ;;  %v1340_v12 = vsel %vm351_vm3, %v1290_v10, 0 }
 0xbf8   : > { %1836 = vmatpush3.bf16.msra.mxu1 %v1340_v12 }
 0xbf9   : > { %1857 = vmatprep.subr.bf16.mxu1 %v1962_v0 }
 0xc71   : > { %v1307_v13 = vpop.trf.xlu0 }
 0xc75   : > { %v1308_v14 = vpop.trf.xlu0 }
 0xc76   : > { %v1323_v50 = vpack.c.bf16 %v1308_v14, %v1307_v13 }
 0xc78   : > { %1837 = vmatprep.mubr.msk.bf16.mxu1 %vm338_vm4, %v1323_v50 }
 0xc79   : > { %v1309_v6 = vpop.trf.xlu0 }
 0xc7d   : > { %v1310_v15 = vpop.trf.xlu0 }
 0xc7e   : > { %v1324_v16 = vpack.c.bf16 %v1310_v15, %v1309_v6 }
 0xc80   : > { %1838 = vmatmul.mubr.msk.bf16.vlgmr.msra.gmra.mxu1 %vm338_vm4, %v1324_v16 }
 0xc81   : > { %v1311_v17 = vpop.trf.xlu0 }
 0xc85   : > { %v1312_v18 = vpop.trf.xlu0 }
 0xc86   : > { %v1325_v20 = vpack.c.bf16 %v1312_v18, %v1311_v17 }
 0xc88   : > { %1841 = vmatprep.mubr.msk.bf16.mxu1 %vm338_vm4, %v1325_v20 }
 0xc89   : > { %v1313_v21 = vpop.trf.xlu0 }
 0xc8d   : > { %v1314_v22 = vpop.trf.xlu0 }
 0xc8e   : > { %v1326_v24 = vpack.c.bf16 %v1314_v22, %v1313_v21 }
 0xc90   : > { %1842 = vmatmul.mubr.msk.bf16.gmra.mxu1 %vm338_vm4, %v1326_v24 }
 0xc91   : > { %1859 = vmatprep.mubr.msk.bf16.mxu1 %vm1963_vm0, %v1962_v0 }
 0xd40   : > { %v1839_v25 = vpop.f32.mrf.mxu1 }
 0xd41   : > { %v1413_v40 = vsel %vm420_vm5, %v1839_v25, -inf }
 0xd42   : > { %v1376_v27 = vpop.f32.mrf.mxu1 }
 0xd43   : > { %v1407_v43 = vsel %vm420_vm5, %v1376_v27, -inf }
 0xd44   : > { %v1840_v28 = vpop.f32.mrf.mxu1 }
 0xd45   : > { %v1416_v41 = vsel %vm420_vm5, %v1840_v28, -inf }
 0xd46   : > { %v1379_v30 = vpop.f32.mrf.mxu1 }
 0xd47   : > { %v1410_v44 = vsel %vm420_vm5, %v1379_v30, -inf }
 0xd50   : > { %v1843_v31 = vpop.f32.mrf.mxu1 }
 0xd51   : > { %v1425_v32 = vsel %vm420_vm5, %v1843_v31, -inf }
 0xd52   : > { %1426 = vmax.xlane.f32.xlu0 %v1425_v32  ;;  %v1392_v33 = vpop.f32.mrf.mxu1 }
 0xd53   : > { %v1419_v36 = vsel %vm420_vm5, %v1392_v33, -inf }
 0xd54   : > { %v1844_v34 = vpop.f32.mrf.mxu1 }
 0xd55   : > { %v1428_v35 = vsel %vm420_vm5, %v1844_v34, -inf }
 0xd56   : > { %1429 = vmax.xlane.f32.xlu1 %v1428_v35  ;;  %v1395_v37 = vpop.f32.mrf.mxu1 }
 0xd57   : > { %v1422_v39 = vsel %vm420_vm5, %v1395_v37, -inf }
 0xd5a   : > { %1420 = vmax.xlane.f32.xlu1 %v1419_v36 }
 0xd5e   : > { %1423 = vmax.xlane.f32.xlu1 %v1422_v39 }
 0xd62   : > { %1414 = vmax.xlane.f32.xlu1 %v1413_v40 }
 0xd66   : > { %1417 = vmax.xlane.f32.xlu1 %v1416_v41 }
 0xd6a   : > { %1408 = vmax.xlane.f32.xlu1 %v1407_v43 }
 0xd6e   : > { %1411 = vmax.xlane.f32.xlu1 %v1410_v44 }
 0xd7f   : > { %585 = vperm.xlu1 %1880, %v234_v45  }
 0xddb   : > { %v1427_v46 = vpop.xlane.xlu0 %1426 }
 0xddc   : > { %v1437_v47 = vsub.f32 %v1843_v31, %v1427_v46 }
 0xdde   : > { %v1451_v48 = vmul.f32 1.442695, %v1437_v47 }
 0xddf   : > { %v1430_v49 = vpop.xlane.xlu1 %1429 }
 0xde0   : > { %v1438_v51 = vsub.f32 %v1844_v34, %v1430_v49  ;;  %1936 = vpow2.f32 %v1451_v48 }
 0xde2   : > { %v1453_v52 = vmul.f32 1.442695, %v1438_v51 }
 0xde3   : > { %v1421_v53 = vpop.xlane.xlu1 %1420 }
 0xde4   : > { %1938 = vpow2.f32 %v1453_v52  ;;  %v1435_v54 = vsub.f32 %v1392_v33, %v1421_v53 }
 0xde6   : > { %v1447_v55 = vmul.f32 1.442695, %v1435_v54 }
 0xde7   : > { %v1424_v56 = vpop.xlane.xlu1 %1423 }
 0xde8   : > { %v1436_v57 = vsub.f32 %v1395_v37, %v1424_v56  ;;  %1940 = vpow2.f32 %v1447_v55 }
 0xdea   : > { %v1449_v29 = vmul.f32 1.442695, %v1436_v57 }
 0xdeb   : > { %v1415_v58 = vpop.xlane.xlu1 %1414 }
 0xdec   : > { %1942 = vpow2.f32 %v1449_v29  ;;  %v1433_v59 = vsub.f32 %v1839_v25, %v1415_v58 }
 0xded   : > { %v1937_v63 = vpop.eup %1936 }
 0xdee   : > { %v1443_v60 = vmul.f32 1.442695, %v1433_v59 }
 0xdef   : > { %v1418_v61 = vpop.xlane.xlu1 %1417 }
 0xdf0   : > { %v1434_v1 = vsub.f32 %v1840_v28, %v1418_v61  ;;  %1944 = vpow2.f32 %v1443_v60 }
 0xdf1   : > { %v1939_v2 = vpop.eup %1938 }
 0xdf2   : > { %v1445_v3 = vmul.f32 1.442695, %v1434_v1  ;;  %v1459_v4 = vpack.c.bf16 %v1939_v2, %v1937_v63 }
 0xdf3   : > { %v1409_v7 = vpop.xlane.xlu1 %1408 }
 0xdf4   : > { %1946 = vpow2.f32 %v1445_v3  ;;  %v1431_v8 = vsub.f32 %v1376_v27, %v1409_v7  ;;  %v1473_v10 = vsel %vm420_vm5, %v1459_v4, 0 }
 0xdf5   : > { %1846 = vmatpush3.bf16.xpose.msra.mxu0 %v1473_v10  ;;  %v1941_v13 = vpop.eup %1940 }
 0xdf6   : > { %1847 = vmatprep.subr.bf16.mxu0 %v1962_v0  ;;  %v1439_v5 = vmul.f32 1.442695, %v1431_v8 }
 0xdf7   : > { %v1412_v12 = vpop.xlane.xlu1 %1411 }
 0xdf8   : > { %v1432_v14 = vsub.f32 %v1379_v30, %v1412_v12  ;;  %1948 = vpow2.f32 %v1439_v5  ;;  %v1286_v30 = vadd.f32 %v2186_v9, %v2061_v23 }
 0xdf9   : > { %v1943_v50 = vpop.eup %1942 }
 0xdfa   : > { %v1441_v6 = vmul.f32 1.442695, %v1432_v14  ;;  %v1458_v15 = vpack.c.bf16 %v1943_v50, %v1941_v13  ;;  %v1455_v31 = vpack.c.bf16 %v1965_v26, %v1286_v30 }
 0xdfb   : > { %v586_v16 = vpop.permute.xlu1 %585 }
 0xdfc   : > { %1950 = vpow2.f32 %v1441_v6  ;;  %v588_v17 = vadd.f32 %v586_v16, %v2089_v42  ;;  %v914_v18 = vadd.f32 %v2136_v19, %v586_v16  ;;  %v1470_v20 = vsel %vm420_vm5, %v1458_v15, 0 }
 0xdfd   : > { %v1240_v21 = vadd.f32 %v2183_v62, %v586_v16  ;;  %1848 = vmatpush3.bf16.xpose.msra.mxu0 %v1470_v20  ;;  %v1945_v22 = vpop.eup %1944 }
 0xdfe   : > { %590 = vst.msk [vmem:[%s2214_s13] sm:$0xf] %vm589_vm6, %v588_v17  ;;  %1650 = vst.msk [vmem:[%s2214_s13 + $0x4] sm:$0xf] %vm589_vm6, %v914_v18  ;;  %1849 = vmatprep.subr.bf16.mxu0 %v1962_v0 }
 0xdff   : > { %1659 = vst.msk [vmem:[%s2214_s13 + $0x8] sm:$0xf] %vm589_vm6, %v1240_v21 }
 0xe01   : > { %v1947_v24 = vpop.eup %1946 }
 0xe02   : > { %v1457_v25 = vpack.c.bf16 %v1947_v24, %v1945_v22 }
 0xe04   : > { %v1467_v42 = vsel %vm420_vm5, %v1457_v25, 0 }
 0xe05   : > { %1850 = vmatpush3.bf16.xpose.msra.mxu0 %v1467_v42  ;;  %v1949_v19 = vpop.eup %1948 }
 0xe06   : > { %1851 = vmatprep.subr.bf16.mxu0 %v1962_v0 }
 0xe09   : > { %v1951_v27 = vpop.eup %1950 }
 0xe0a   : > { %v1456_v28 = vpack.c.bf16 %v1951_v27, %v1949_v19 }
 0xe0c   : > { %v1464_v62 = vsel %vm420_vm5, %v1456_v28, 0 }
 0xe0d   : > { %1852 = vmatpush3.bf16.xpose.msra.mxu0 %v1464_v62 }
 0xe14   : > { %1854 = vmatmul.mubr.msk.bf16.vlgmr.msra.gmra.mxu0 %vm420_vm5, %v1455_v31 }
 0xed4   : > { %v1509_v32 = vpop.f32.mrf.mxu0 }
 0xed5   : > { %v1516_v33 = vpack.c.bf16 %v1509_v32, %v1509_v32 }
 0xed6   : > { %v1855_v34 = vpop.f32.mrf.mxu0 }
 0xed7   : > { %v1518_v35 = vsel %vm351_vm3, %v1516_v33, 0 }
 0xed8   : > { %v1512_v0 = vpop.f32.mrf.mxu0  ;;  %1858 = vmatpush3.bf16.msra.mxu1 %v1518_v35 }
 0xed9   : > { %1952 = vrcp.f32 %v1512_v0 }
 0xeda   : > { %v1856_v36 = vpop.f32.mrf.mxu0 }
 0xedb   : > { %1860 = vmatmul.mubr.msk.bf16.vlgmr.msra.gmra.mxu1 %vm338_vm4, %v2076_v11 }
 0xee6   : > { %v1953_v37 = vpop.eup %1952 }
 0xee7   : > { %v1564_v23 = vrot.slane %v1953_v37, %v2086_v38 }
 0xf9b   : > { %v1554_v9 = vpop.f32.mrf.mxu1 }
 0xf9c   : > { %v1565_v26 = vmul.f32 %v1564_v23, %v1554_v9 }
 0xf9d   : > { %v1861_v39 = vpop.f32.mrf.mxu1 }
 0xf9e   : > { %v1566_v40 = vadd.f32 %v1565_v26, %v586_v16 }
 0xf9f   : > { %v1557_v41 = vpop.f32.mrf.mxu1 }
 0xfa0   : > { %1668 = vst.msk [vmem:[%s2214_s13 + $0xc] sm:$0xf] %vm589_vm6, %v1566_v40 }
 0xfa1   : > { %v1862_v43 = vpop.f32.mrf.mxu1 }
 0xfa2 PF: > { %s15_s18 = sadd.s32 1, %s1960_s18  }
 0xfa3   : > { %p12_p4 = scmp.ge.s32.totalorder %s15_s18, 4  }
 0xfa5   :  { %14 = sbr.rel (!%p12_p4) target bundleno = 1 (0x1), region = 76 }

</bundles_post_ra>
